<compile_context>
chip_gen: v7x
topology: tpu7x:2x2x1
jax: 0.10.0
libtpu: 0.0.40
codegen_flags: <defaults>
</compile_context>

<pallas_src>
import functools

import jax
import jax.numpy as jnp
from jax import lax
from jax.experimental import pallas as pl
from jax.experimental.pallas import tpu as pltpu


# ---------------------------------------------------------------------------
# Hardware / tiling helpers
# ---------------------------------------------------------------------------
def _vmem_limit_bytes():
    """Chip-aware scoped-VMEM limit: 64 MiB on 128-MiB parts (v5e/v6e),
    32 MiB on 64-MiB parts (v7x)."""
    cap = 128 * 1024 * 1024
    try:
        info = pltpu.get_tpu_info()
        for attr in ("vmem_capacity_bytes", "vmem_size_bytes", "vmem_bytes"):
            v = getattr(info, attr, None)
            if isinstance(v, int) and v > 0:
                cap = v
                break
    except Exception:
        pass
    return 64 * 1024 * 1024 if cap >= 128 * 1024 * 1024 else 32 * 1024 * 1024


def _num_tensorcores():
    """Best-effort TensorCore count (2 on v7x, 1 on v5e/v6e). Defaults to 1."""
    try:
        info = pltpu.get_tpu_info()
        for attr in ("num_tensorcores", "tensorcore_count", "num_cores",
                     "cores_per_chip", "core_count"):
            v = getattr(info, attr, None)
            if isinstance(v, int) and v > 0:
                return v
    except Exception:
        pass
    return 1


def _pad_features(x):
    """Reshape NCHW -> (m, k) and zero-pad k to a multiple of 128 so K tiling
    (and DMA/MXU overlap) applies even for non-power-of-two spatial sizes.
    Zero columns do not change F @ F.T."""
    a, b, c, d = x.shape
    m, k = a * b, c * d
    inv_norm = 1.0 / float(a * b * c * d)      # normalizer uses ORIGINAL dims
    feats = x.reshape(m, k)
    k_pad = ((k + 127) // 128) * 128
    if k_pad != k:
        feats = jnp.pad(feats, ((0, 0), (0, k_pad - k)))
    return feats, m, k_pad, inv_norm


def _choose_k_tile(k, m, fixed_bytes, vmem_limit):
    """k is lane-padded (multiple of 128).  Pick the largest multiple-of-128
    divisor of k such that the double-buffered (m, tk) f32 feature slab plus
    the already-committed buffers (`fixed_bytes`: 2x target block + resident G
    block, etc.) stays under the scoped-VMEM limit, while forcing nk >= 2 so
    the feature HBM stream overlaps the MXU."""
    if k <= 128:
        return k
    budget = max(vmem_limit - fixed_bytes - 256 * 1024, 2 * m * 128 * 4)
    max_tk = max(128, (budget // (2 * m * 4)) // 128 * 128)
    cap = min(max_tk, max(128, k // 2))        # force nk >= 2
    t = (cap // 128) * 128
    while t >= 128:
        if k % t == 0:
            return t
        t -= 128
    return 128                                 # k is a multiple of 128


def _choose_col_tiles(m, col_split=None):
    """Column split of G across TensorCores.  Auto mode only splits on 2-TC
    parts (v7x) and only when the per-core tile stays >= 256 lanes; on 1-TC
    chips the split would just double feature HBM traffic."""
    if col_split is not None:
        nj = int(col_split)
        if nj > 1 and m % (128 * nj) == 0:
            return nj, m // nj
        return 1, m
    if _num_tensorcores() >= 2 and m >= 512 and m % 256 == 0:
        return 2, m // 2
    return 1, m


# ---------------------------------------------------------------------------
# Kernels
# ---------------------------------------------------------------------------
def _gram_kernel(feat_ref, g_ref, *, inv_norm, cast_bf16):
    """G = (F @ F.T) * inv_norm, accumulated directly into the resident
    output block across K tiles (no scratch accumulator)."""
    kk = pl.program_id(0)

    @pl.when(kk == 0)
    def _():
        g_ref[...] = jnp.zeros_like(g_ref)

    f = feat_ref[...]
    if cast_bf16:
        f = f.astype(jnp.bfloat16)
    # F @ F.T without materializing the transpose: contract axis 1 of both.
    g_ref[...] += lax.dot_general(
        f, f,
        dimension_numbers=(((1,), (1,)), ((), ())),
        preferred_element_type=jnp.float32)

    @pl.when(kk == pl.num_programs(0) - 1)
    def _():
        g_ref[...] = g_ref[...] * inv_norm


def _style_loss_kernel(feat_ref, tgt_ref, g_ref, loss_ref, *,
                       inv_norm, tn, nj, cast_bf16):
    """Fused forward: a column block of G (MXU, K-accumulated into the
    resident output block) plus that block's partial MSE sum."""
    kk = pl.program_id(1)
    nk = pl.num_programs(1)

    @pl.when(kk == 0)
    def _():
        g_ref[...] = jnp.zeros_like(g_ref)

    f = feat_ref[...]                           # (m, tk): all rows of F
    if cast_bf16:
        f = f.astype(jnp.bfloat16)
    if nj == 1:
        rows = f                                # columns of G == all rows of F
    else:
        # Multi-TC path only (v7x, m >= 512): the row block for this column
        # tile is sliced from the already-resident feature slab.
        j = pl.program_id(0)
        start = pl.multiple_of(j * tn, tn)
        rows = feat_ref[pl.ds(start, tn), :]    # (tn, tk)
        if cast_bf16:
            rows = rows.astype(jnp.bfloat16)

    # G[:, j*tn:(j+1)*tn] += F @ rows.T  (contract lane axis of both operands)
    g_ref[...] += lax.dot_general(
        f, rows,
        dimension_numbers=(((1,), (1,)), ((), ())),
        preferred_element_type=jnp.float32)

    @pl.when(kk == nk - 1)
    def _():
        g = g_ref[...] * inv_norm
        g_ref[...] = g
        diff = g - tgt_ref[...]
        # Contract with the wrapper: the partial SSE for column block j is
        # broadcast across the whole (8, 128) loss block at row-block j; the
        # wrapper reads element [j*8, 0] (loss_parts[0::8, 0]).
        loss_ref[...] = jnp.broadcast_to(jnp.sum(diff * diff), loss_ref.shape)


# ---------------------------------------------------------------------------
# Wrappers
# ---------------------------------------------------------------------------
def gram_matrix(x, *, k_tile=None, cast_bf16=True):
    """Pallas equivalent of the PyTorch gram_matrix. x: (a, b, c, d) NCHW."""
    feats, m, k, inv_norm = _pad_features(x)
    vmem_limit = _vmem_limit_bytes()
    tk = k_tile if k_tile is not None else _choose_k_tile(
        k, m, fixed_bytes=2 * m * m * 4, vmem_limit=vmem_limit)
    assert k % tk == 0, "k_tile must evenly divide the padded c*d"
    nk = k // tk

    return pl.pallas_call(
        functools.partial(_gram_kernel, inv_norm=inv_norm, cast_bf16=cast_bf16),
        out_shape=jax.ShapeDtypeStruct((m, m), jnp.float32),
        grid=(nk,),
        in_specs=[pl.BlockSpec((m, tk), lambda kk: (0, kk))],
        out_specs=pl.BlockSpec((m, m), lambda kk: (0, 0)),
        compiler_params=pltpu.CompilerParams(
            dimension_semantics=("arbitrary",),
            vmem_limit_bytes=vmem_limit,
        ),
        cost_estimate=pl.CostEstimate(
            flops=2 * m * m * k,
            transcendentals=0,
            bytes_accessed=m * k * 4 + m * m * 4,
        ),
    )(feats)


def style_loss_forward(inp, target_gram, *, k_tile=None, cast_bf16=True,
                       col_split=None):
    """Returns (G, loss). `inp` itself is passed through unchanged by StyleLoss."""
    feats, m, k, inv_norm = _pad_features(inp)
    vmem_limit = _vmem_limit_bytes()
    nj, tn = _choose_col_tiles(m, col_split)
    tk = k_tile if k_tile is not None else _choose_k_tile(
        k, m, fixed_bytes=4 * m * tn * 4, vmem_limit=vmem_limit)
    assert k % tk == 0, "k_tile must evenly divide the padded c*d"
    nk = k // tk

    kernel = functools.partial(
        _style_loss_kernel, inv_norm=inv_norm, tn=tn, nj=nj, cast_bf16=cast_bf16)

    g, loss_parts = pl.pallas_call(
        kernel,
        out_shape=(
            jax.ShapeDtypeStruct((m, m), jnp.float32),
            # one lane-dense (8, 128) block per column tile; element [j*8, 0]
            # holds that tile's partial sum of squared differences (the kernel
            # broadcasts it across the whole block).
            jax.ShapeDtypeStruct((nj * 8, 128), jnp.float32),
        ),
        grid=(nj, nk),
        in_specs=[
            pl.BlockSpec((m, tk), lambda j, kk: (0, kk)),   # feature K slab
            pl.BlockSpec((m, tn), lambda j, kk: (0, j)),    # target column block
        ],
        out_specs=(
            pl.BlockSpec((m, tn), lambda j, kk: (0, j)),    # G column block (resident acc)
            pl.BlockSpec((8, 128), lambda j, kk: (j, 0)),   # partial-loss block
        ),
        compiler_params=pltpu.CompilerParams(
            dimension_semantics=("parallel", "arbitrary"),
            vmem_limit_bytes=vmem_limit,
        ),
        cost_estimate=pl.CostEstimate(
            flops=2 * m * m * k,
            transcendentals=0,
            bytes_accessed=nj * m * k * 4 + 2 * m * m * 4,
        ),
    )(feats, target_gram)

    loss = jnp.sum(loss_parts[0::8, 0]) * (1.0 / float(m * m))  # mean over m*m
    return g, loss


class StyleLoss:
    """JAX/Pallas port of the PyTorch StyleLoss module (forward only)."""

    def __init__(self, target_feature, *, cast_bf16=True):
        self.cast_bf16 = cast_bf16
        # target = gram_matrix(target_feature).detach(); computed with the SAME
        # MXU-input precision as the forward pass so quantization errors track.
        self.target = jax.lax.stop_gradient(
            gram_matrix(target_feature, cast_bf16=cast_bf16))
        self.loss = None

    def __call__(self, inp):
        _, loss = style_loss_forward(inp, self.target, cast_bf16=self.cast_bf16)
        self.loss = loss
        return inp  # forward returns the input unchanged


# ---------------------------------------------------------------------------
# Main
# ---------------------------------------------------------------------------
if __name__ == "__main__":
    key = jax.random.PRNGKey(0)
    k1t, k1x, k2t, k2x, k3t, k3x, k4t, k4x = jax.random.split(key, 8)

    def gram_ref(t):
        a, b, c, d = t.shape
        f = t.reshape(a * b, c * d).astype(jnp.float32)
        g = jnp.dot(f, f.T, precision=lax.Precision.HIGHEST)
        return g / (a * b * c * d)

    # --- case 1: module-style usage, bf16 MXU-input default ------------------
    target_feature = jax.random.normal(k1t, (2, 4, 16, 16), dtype=jnp.float32)
    x = jax.random.normal(k1x, (2, 4, 16, 16), dtype=jnp.float32)

    module = StyleLoss(target_feature)
    out = jax.block_until_ready(module(x))
    loss = jax.block_until_ready(module.loss)

    g_t = gram_ref(target_feature)
    g_x = gram_ref(x)
    loss_ref = jnp.mean((g_x - g_t) ** 2)

    assert out.shape == x.shape and jnp.allclose(out, x)
    assert jnp.allclose(module.target, g_t, rtol=2e-2, atol=1e-3)
    assert jnp.allclose(loss, loss_ref, rtol=5e-2, atol=1e-5)

    # --- case 2: f32 path, K-tiled accumulation (nk = 4), tight tolerance ----
    tf2 = jax.random.normal(k2t, (1, 8, 16, 32), dtype=jnp.float32)   # m=8, k=512
    x2 = jax.random.normal(k2x, (1, 8, 16, 32), dtype=jnp.float32)
    tgt2 = gram_matrix(tf2, k_tile=128, cast_bf16=False)
    g2, l2 = style_loss_forward(x2, tgt2, k_tile=128, cast_bf16=False)
    g2 = jax.block_until_ready(g2)
    assert jnp.allclose(tgt2, gram_ref(tf2), rtol=1e-5, atol=1e-5)
    assert jnp.allclose(g2, gram_ref(x2), rtol=1e-5, atol=1e-5)
    assert jnp.allclose(l2, jnp.mean((gram_ref(x2) - gram_ref(tf2)) ** 2),
                        rtol=1e-5, atol=1e-6)

    # --- case 3: non-multiple-of-128 spatial size -> K zero-padding path -----
    tf3 = jax.random.normal(k3t, (2, 4, 12, 12), dtype=jnp.float32)   # k=144 -> 256
    x3 = jax.random.normal(k3x, (2, 4, 12, 12), dtype=jnp.float32)
    tgt3 = gram_matrix(tf3, cast_bf16=False)
    g3, l3 = style_loss_forward(x3, tgt3, cast_bf16=False)
    g3 = jax.block_until_ready(g3)
    assert jnp.allclose(tgt3, gram_ref(tf3), rtol=1e-5, atol=1e-5)
    assert jnp.allclose(g3, gram_ref(x3), rtol=1e-5, atol=1e-5)
    assert jnp.allclose(l3, jnp.mean((gram_ref(x3) - gram_ref(tf3)) ** 2),
                        rtol=1e-5, atol=1e-6)

    # --- case 4: forced column split (nj = 2) validates the multi-TC path ----
    tf4 = jax.random.normal(k4t, (4, 64, 8, 16), dtype=jnp.float32)   # m=256, k=128
    x4 = jax.random.normal(k4x, (4, 64, 8, 16), dtype=jnp.float32)
    tgt4 = gram_matrix(tf4, cast_bf16=False)
    g4, l4 = style_loss_forward(x4, tgt4, cast_bf16=False, col_split=2)
    g4 = jax.block_until_ready(g4)
    assert jnp.allclose(g4, gram_ref(x4), rtol=1e-5, atol=1e-5)
    assert jnp.allclose(l4, jnp.mean((gram_ref(x4) - gram_ref(tf4)) ** 2),
                        rtol=1e-5, atol=1e-6)

    print("KERNEL_OK")
</pallas_src>

<mosaic_0001>
module attributes {stable_mosaic.version = 11 : i64} {
  func.func @_gram_kernel(%arg0: i32, %arg1: memref<8x128xf32, #tpu.memory_space<vmem>>, %arg2: memref<8x8xf32, #tpu.memory_space<vmem>>) attributes {dimension_semantics = [#tpu.dimension_semantics<arbitrary>], iteration_bounds = array<i64: 2>, scalar_prefetch = 0 : i64, scratch_operands = 0 : i64, tpu.core_type = #tpu.core_type<tc>, window_params = [{transform_indices = @transform_0, window_bounds = array<i64: 8, 128>}, {pipeline_mode = #tpu.pipeline_mode<synchronous>, transform_indices = @transform_1, window_bounds = array<i64: 8, 8>}]} {
    %c0_i32 = arith.constant 0 : i32
    %0 = arith.cmpi eq, %arg0, %c0_i32 : i32
    %1 = arith.extui %0 : i1 to i32
    %c0_i32_0 = arith.constant 0 : i32
    %2 = arith.cmpi ne, %1, %c0_i32_0 : i32
    scf.if %2 {
      %cst_7 = arith.constant 0.000000e+00 : f32
      %12 = vector.broadcast %cst_7 : f32 to vector<8x8xf32>
      %c0_8 = arith.constant 0 : index
      %c0_9 = arith.constant 0 : index
      %13 = vector.load %arg2[%c0_8, %c0_9] : memref<8x8xf32, #tpu.memory_space<vmem>>, vector<8x8xf32>
      tpu.vector_store %arg2[%c0_8, %c0_9], %12 {strides = array<i32>} : memref<8x8xf32, #tpu.memory_space<vmem>>, vector<8x8xf32>,
    } else {
    }
    %c0 = arith.constant 0 : index
    %c0_1 = arith.constant 0 : index
    %3 = vector.load %arg1[%c0, %c0_1] : memref<8x128xf32, #tpu.memory_space<vmem>>, vector<8x128xf32>
    %4 = arith.truncf %3 : vector<8x128xf32> to vector<8x128xbf16>
    %c0_2 = arith.constant 0 : index
    %c0_3 = arith.constant 0 : index
    %5 = vector.load %arg2[%c0_2, %c0_3] : memref<8x8xf32, #tpu.memory_space<vmem>>, vector<8x8xf32>
    %cst = arith.constant dense<0.000000e+00> : vector<8x8xf32>
    %6 = tpu.matmul %4, %4, %cst {dimension_numbers = #tpu.dot_dimension_numbers<[1], [1], [0], [0], [0, 0, 1, 0], [], []>} : vector<8x128xbf16>, vector<8x128xbf16>, vector<8x8xf32> -> vector<8x8xf32>
    %7 = arith.addf %5, %6 : vector<8x8xf32>
    %c0_4 = arith.constant 0 : index
    %c0_5 = arith.constant 0 : index
    %8 = vector.load %arg2[%c0_4, %c0_5] : memref<8x8xf32, #tpu.memory_space<vmem>>, vector<8x8xf32>
    tpu.vector_store %arg2[%c0_4, %c0_5], %7 {strides = array<i32>} : memref<8x8xf32, #tpu.memory_space<vmem>>, vector<8x8xf32>,
    %c1_i32 = arith.constant 1 : i32
    %9 = arith.cmpi eq, %arg0, %c1_i32 : i32
    %10 = arith.extui %9 : i1 to i32
    %c0_i32_6 = arith.constant 0 : i32
    %11 = arith.cmpi ne, %10, %c0_i32_6 : i32
    scf.if %11 {
      %c0_7 = arith.constant 0 : index
      %c0_8 = arith.constant 0 : index
      %12 = vector.load %arg2[%c0_7, %c0_8] : memref<8x8xf32, #tpu.memory_space<vmem>>, vector<8x8xf32>
      %cst_9 = arith.constant 4.8828125E-4 : f32
      %13 = vector.broadcast %cst_9 : f32 to vector<8x8xf32>
      %14 = arith.mulf %12, %13 : vector<8x8xf32>
      %c0_10 = arith.constant 0 : index
      %c0_11 = arith.constant 0 : index
      %15 = vector.load %arg2[%c0_10, %c0_11] : memref<8x8xf32, #tpu.memory_space<vmem>>, vector<8x8xf32>
      tpu.vector_store %arg2[%c0_10, %c0_11], %14 {strides = array<i32>} : memref<8x8xf32, #tpu.memory_space<vmem>>, vector<8x8xf32>,
    } else {
    }
    return
  }
  func.func @transform_0(%arg0: i32) -> (i32, i32) {
    %c0_i32 = arith.constant 0 : i32
    %c0_i32_0 = arith.constant 0 : i32
    return %c0_i32, %arg0 : i32, i32
  }
  func.func @transform_1(%arg0: i32) -> (i32, i32) {
    %c0_i32 = arith.constant 0 : i32
    %c0_i32_0 = arith.constant 0 : i32
    %c0_i32_1 = arith.constant 0 : i32
    return %c0_i32, %c0_i32_0 : i32, i32
  }
}

</mosaic_0001>

<bundles_post_ra>
// kernel: tpu_custom_call.1
= control target key start
LH: loop header
LB: loop body
LE: loop exit
PB: predicated region body
PF: predicated region fallthrough
CT: control target
= control target key end

     0   :  { %6 = vsyncpa [#allocation3], 0  ;;  %s545_s0 = inlined_call_operand.hbm [shape: f32[8,256], index: 0, kind: input, shape index: {}]   ;;  %s546_s1 = inlined_call_operand.hbm [shape: f32[8,8], index: 1, kind: output, shape index: {}]  }
   0x1   :  { %8 = vsyncpa [#allocation3 + $0x1], 0 }
   0x2   :  { %9 = vsyncpa [#allocation4], 0  ;;  %s418_s6 = smov 0   ;;  %s420_s7 = smov 0  }
   0x3   :  { %s422_s8 = smov 0   ;;  %s424_s9 = smov 0  }
   0x4 LB: > { %s437_s10 = sadd.s32 4294967295, %s401_s9   ;;  %s440_s11 = sadd.s32 1, %s401_s9   ;;  %s401_s9 = sphi %s424_s9, %s554_s9   ;;  %s397_s8 = sphi %s422_s8, %s553_s8   ;;  %s393_s7 = sphi %s420_s7, %s552_s7   ;;  %s389_s6 = sphi %s418_s6, %s551_s6  }
   0x5   : > { %s19_s12 = ssub.s32 %s401_s9, %s440_s11  ;;  %s22_s13 = sadd.s32 1, %s397_s8 }
   0x6   : > { %p20_p0 = scmp.eq.s32.totalorder %s19_s12, 0  ;;  %p29_p1 = scmp.ne.s32.totalorder %s397_s8, %s393_s7 }
   0x7   : > { %p30_p2 = scmp.eq.s32.totalorder %s401_s9, 0  ;;  %p35_p3 = scmp.ne.s32.totalorder %s393_s7, %s389_s6 }
   0x8   : > { %s450_s14 = scalar_select %p20_p0, %s397_s8, %s22_s13  }
   0x9   : > { %p31_p4 = por %p30_p2, %p29_p1  ;;  %p36_p5 = scmp.eq.s32.totalorder %s437_s10, 0 }
   0xa   : > { %p268_p6 = scmp.lt.s32.totalorder %s401_s9, 2  ;;  %s80_s16 = sand.u32 1, %s397_s8  }
   0xb   : > { %p454_p7 = por %p36_p5, %p35_p3  ;;  %s240_s17 = sshll.u32 %s80_s16, 3 }
   0xc   : > { %s241_s18 = sshll.u32 %s401_s9, 7  ;;  %s84_s22 = scalar_lea.vmem [#allocation2], %s240_s17 }
   0xd   : > { %s463_s21 = scalar_lea.hbm %s545_s0, %s241_s18  ;;  %s91_s23 = sshll.u32 %s84_s22, 4  ;;  %s465_s23 = int_to_ptr.vmem [resolvable:$true] %s91_s23 }
   0xe   : > { %p467_p8 = pnand %p268_p6, %p31_p4  ;;  %s81_s25 = scalar_lea.sflag [#allocation3], %s80_s16 }
   0xf   : > { %s307_s26 = scalar_lea.hbm %s463_s21, 128  ;;  %s312_s29 = scalar_lea.hbm %s545_s0, 256 }
  0x10   : > { %p308_p11 = scmp.ne.s32.totalorder %s463_s21, %s307_s26  ;;  %p309_p12 = pneg %p467_p8 }
  0x11   : > { %p313_p1 = scmp.lt.u32.totalorder %s463_s21, %s545_s0  ;;  %p314_p2 = scmp.lt.u32.totalorder %s312_s29, %s307_s26 }
  0x12   : > { %p310_p13 = pnand %p309_p12, %p308_p11  ;;  %p316_p4 = scmp.lt.u32.totalorder %s307_s26, %s463_s21 }
  0x13   : > { %p315_p3 = por %p314_p2, %p313_p1 }
  0x14   : > { %p311_p0 = pneg %p310_p13 }
  0x15   : > { %p317_p5 = por %p316_p4, %p315_p3 }
  0x17   : > { %p318_p6 = pnand %p317_p5, %p311_p0 }
  0x19   : > { %321 = shalt.err (!%p318_p6)
}
  0x1a   : > { %s322_s3 = scalar_lea.vmem %s465_s23, 128  ;;  %s403_s4 = smov [#allocation2]  }
  0x1b   : > { %p323_p11 = scmp.ne.s32.totalorder %s465_s23, %s322_s3  ;;  %s327_s5 = sshll.u32 %s403_s4, 4  ;;  %s328_s5 = int_to_ptr.vmem [resolvable:$false] %s327_s5 }
  0x1c   : > { %s329_s6 = scalar_lea.vmem %s328_s5, 256  ;;  %p330_p10 = scmp.lt.s32.totalorder %s465_s23, %s328_s5 }
  0x1d   : > { %p325_p13 = pnand %p323_p11, %p309_p12  ;;  %p331_p1 = scmp.lt.s32.totalorder %s329_s6, %s322_s3 }
  0x1f   : > { %p326_p9 = pneg %p325_p13  ;;  %p332_p2 = por %p331_p1, %p330_p10 }
  0x21   : > { %p333_p3 = pnand %p332_p2, %p326_p9 }
  0x23   : > { %336 = shalt.err (!%p333_p3)
}
  0x24   : > { %267 = dma.hbm_to_vmem [thread:$0]  (!%p467_p8), %s463_s21, 128, %s465_s23, %s81_s25  }
  0x25   : > { %p549_p0 = scmp.lt.s32.totalorder %s401_s9, 3  ;;  %p550_p4 = scmp.ge.s32.totalorder %s401_s9, 1 }
  0x27   : > { %p97_p12 = pnand %p550_p4, %p549_p0 }
  0x28   : > { %s102_s12 = sand.u32 (!%p97_p12), 1, %s393_s7  }
  0x29   : > { %100 = sbr.rel (%p97_p12) target bundleno = 318 (0x13e), region = 24  ;;  %s243_s13 = sshll.u32 (!%p97_p12), %s102_s12, 3 }
  0x2a   : > { %s103_s16 = scalar_lea.sflag (!%p97_p12), [#allocation3], %s102_s12  ;;  %s106_s17 = scalar_lea.vmem (!%p97_p12), [#allocation2], %s243_s13 }
  0x30   : > { %380 = dma.done.wait (%p454_p7), %s103_s16, 128  }
  0x31   : > { %382 = vsyncadd (%p454_p7), %s103_s16, 4294967168  ;;  %p244_p9 = scmp.ne.s32.totalorder %s437_s10, 0 }
  0x32   : > { %vm125_vm0 = vcmask (!%p244_p9), 64512   ;;  %v404_v0 = vmov (!%p244_p9), 0.0  }
  0x33   : > { %124 = sbr.rel (%p244_p9) target bundleno = 58 (0x3a), region = 32  ;;  %126 = vst.msk [vmem:[#allocation5] sm:$0xff] (!%p244_p9), %vm125_vm0, %v404_v0 }
  0x3a PF: > { %v127_v1 = vld [vmem:[%s106_s17] sm:$0xff]  ;;  %v405_v2 = vmov 0.0   ;;  %vm406_vm1 = vmmov 0   ;;  %v129_v4 = vld [vmem:[#allocation5] sm:$0xff]  ;;  %vm171_vm2 = vcmask 64512   ;;  %p245_p7 = scmp.ne.s32.totalorder %s437_s10, 1 }
  0x3b   : > { %252 = vmatprep.subr.bf16.mxu0 %v405_v2  ;;  %v128_v3 = vpack.c.bf16 %v127_v1, %v127_v1  ;;  %254 = vmatprep.mubr.msk.bf16.mxu0 %vm406_vm1, %v405_v2 }
  0x3d   : > { %253 = vmatpush3.bf16.xpose.msra.mxu0 %v128_v3 }
  0x44   : > { %255 = vmatmul.mubr.bf16.vlgmr.msra.gmra.mrb[0].mxu0 %v128_v3 }
 0x114   : > { %176 = sbr.rel (%p245_p7) target bundleno = 293 (0x125), region = 36 }
 0x117   : > { %v164_v5 = vpop.f32.mrb[0].mxu0 }
 0x118   : > { %v170_v6 = vadd.f32 %v164_v5, %v129_v4  ;;  %v256_v7 = vpop.f32.mrb[1].mxu0 }
 0x119   : > { %v167_v8 = vpop.f32.mrb[2].mxu0 }
 0x11a   : > { %172 = vst.msk [vmem:[#allocation5] sm:$0xff] %vm171_vm2, %v170_v6  ;;  %v257_v9 = vpop.f32.mrb[3].mxu0 }
 0x121   : > { %v177_v10 = vld [vmem:[#allocation5] sm:$0xff] }
 0x122   : > { %v178_v11 = vmul.f32 0.00048828125, %v177_v10 }
 0x124   : > { %179 = vst.msk [vmem:[#allocation5] sm:$0xff] %vm171_vm2, %v178_v11 }
 0x125 PF: > { %p269_p8 = scmp.eq.s32.totalorder %s437_s10, 1  ;;  %s407_s9 = smov [#allocation5]  }
 0x126   : > { %s187_s15 = sshll.u32 %s407_s9, 4  ;;  %s188_s15 = int_to_ptr.vmem [resolvable:$true] %s187_s15 }
 0x127   : > { %s337_s18 = scalar_lea.vmem %s188_s15, 128  ;;  %p344_p11 = scmp.lt.s32.totalorder %s188_s15, %s188_s15 }
 0x128   : > { %p338_p10 = scmp.ne.s32.totalorder %s188_s15, %s337_s18  ;;  %p345_p13 = scmp.lt.s32.totalorder %s337_s18, %s337_s18 }
 0x12a   : > { %p339_p5 = pnand %p338_p10, %p269_p8  ;;  %p346_p1 = por %p345_p13, %p344_p11 }
 0x12c   : > { %p340_p6 = pneg %p339_p5 }
 0x12e   : > { %p347_p2 = pnand %p346_p1, %p340_p6 }
 0x130   : > { %350 = shalt.err (!%p347_p2)
}
 0x131   : > { %s351_s21 = scalar_lea.hbm %s546_s1, 128 }
 0x132   : > { %p352_p3 = scmp.ne.s32.totalorder %s546_s1, %s351_s21  ;;  %p357_p12 = scmp.lt.u32.totalorder %s351_s21, %s546_s1 }
 0x134   : > { %p353_p0 = pnand %p352_p3, %p269_p8 }
 0x136   : > { %p354_p4 = pneg %p353_p0 }
 0x138   : > { %p359_p9 = pnand %p357_p12, %p354_p4 }
 0x13a   : > { %362 = shalt.err (!%p359_p9)
}
 0x13b   : > { %261 = dma.vmem_to_hbm [thread:$0]  (%p269_p8), %s188_s15, 128, %s546_s1, [#allocation4]  }
 0x13c   : > { %384 = dma.done.wait (%p269_p8), [#allocation4], 128  }
 0x13d   : > { %386 = vsyncadd (%p269_p8), [#allocation4], 4294967168 }
 0x13e PF: > { %p12_p7 = scmp.ge.s32.totalorder %s440_s11, 4   ;;  %s551_s6 = smov %s393_s7 }
 0x13f   : > { %s552_s7 = smov %s397_s8  ;;  %s553_s8 = smov %s450_s14 }
 0x140   : > { %s554_s9 = smov %s440_s11  ;;  %14 = sbr.rel (!%p12_p7) target bundleno = 4 (0x4), region = 69 }
 0x147   :  { %200 = vsyncpa [#allocation3], 1 }
 0x148   :  { %202 = vsyncpa [#allocation3 + $0x1], 1 }
 0x149   :  { %203 = vsyncpa [#allocation4], 1 }
 0x14a   :  { %205 = vsyncpa [#allocation4 + $0x1], 1 }

</bundles_post_ra>
